<compile_context>
chip_gen: v5e
topology: v5e:2x2
jax: 0.10.0
libtpu: 0.0.40
codegen_flags: <defaults>
</compile_context>

<pallas_src>
import jax
import jax.numpy as jnp
from jax.experimental import pallas as pl
from jax.experimental.pallas import tpu as pltpu


# ----------------------------- Pallas kernel ------------------------------ #
def _m0_conv1x1_kernel(w_ref, b_ref, x_ref, o_ref):
    # w_ref: (C_out, C_in)  full weight (resident across the grid)
    # b_ref: (C_out, 1)     bias, broadcast over the lane axis
    # x_ref: (C_in, tile_n) one lane tile of one batch element's (C, H*W) slab
    # o_ref: (C_out, tile_n)
    acc = jnp.dot(w_ref[...], x_ref[...], preferred_element_type=jnp.float32)
    o_ref[...] = (acc + b_ref[...]).astype(o_ref.dtype)


# ------------------------------- helpers ----------------------------------- #
def _ceil_to(x, m):
    return ((x + m - 1) // m) * m


def _tpu_hints():
    """Best-effort trace-time hardware hints (VMEM capacity, multi-TC chip).

    v7x exposes 64 MiB VMEM per TensorCore (2 TCs/chip); v5e/v6e have 128 MiB
    and a single TC.  Conservative fallback if the query is unavailable.
    """
    try:
        vmem_cap = int(pltpu.get_tpu_info().vmem_capacity_bytes)
        multi_tc = vmem_cap <= 96 * 1024 * 1024
    except Exception:
        vmem_cap = 64 * 1024 * 1024
        multi_tc = False
    return vmem_cap, multi_tc


def _pick_tile_n(hw, batch, cap, min_parallel):
    """Lane-tile width.

    - hw < 128: full extent (only legal sub-lane choice; block == full dim).
    - otherwise: either one exact full-extent block (when it fits the cap and
      no extra parallelism is needed), or a lane-aligned (multiple of 128)
      tile with a cdiv grid and a masked partial last block.  Never unbounded.
    """
    if hw < 128:
        return hw
    want_tiles = max(1, -(-min_parallel // batch))   # lane tiles per batch elt
    want_tiles = min(want_tiles, -(-hw // 128))      # can't go below 128 lanes
    if want_tiles == 1 and hw <= cap:
        return hw                                    # exact, single block
    tile = min(cap, _ceil_to(-(-hw // want_tiles), 128))
    return max(128, tile)


# ------------------------------- wrapper ----------------------------------- #
def m0_conv1x1(x_nchw, weight, bias, *, tile_cap=131072, force_pallas=False):
    """1x1 conv (stride 1) over NCHW input via a Pallas matmul kernel.

    weight: (C_out, C_in) — the (kh=1, kw=1) dims of the Conv2d weight squeezed.
    bias:   (C_out,)
    """
    B, C_in, H, W = x_nchw.shape
    C_out = weight.shape[0]
    HW = H * W

    # Tiny-problem fallback: custom-call launch + per-grid-step overhead
    # dominates below ~0.5 MiB of traffic; XLA's fused einsum is equally
    # memory-bound with lower fixed cost.
    if (not force_pallas) and 4 * B * HW * (C_in + C_out) < 512 * 1024:
        x3 = x_nchw.reshape(B, C_in, HW)
        out3 = jnp.einsum("oc,bcn->bon", weight, x3) + bias[None, :, None]
        return out3.reshape(B, C_out, H, W).astype(x_nchw.dtype)

    vmem_cap, multi_tc = _tpu_hints()
    # On v7x, make sure both TensorCores get work even at B=1.
    min_parallel = 4 if multi_tc else 1

    tile_n = _pick_tile_n(HW, B, tile_cap, min_parallel)
    grid = (B, pl.cdiv(HW, tile_n))

    # NCHW -> (B, C_in, H*W): free, contiguous reshape (no HBM transpose).
    x3 = x_nchw.reshape(B, C_in, HW)
    b2d = bias.reshape(C_out, 1)

    # VMEM budget: double-buffered input + output tiles (+ tiny weight/bias).
    needed_vmem = 2 * (C_in + C_out) * tile_n * 4 + 4 * (C_out * C_in + C_out)
    vmem_limit = max(2 * needed_vmem, 4 * 1024 * 1024)
    vmem_limit = min(vmem_limit, 48 * 1024 * 1024, (3 * vmem_cap) // 4)

    cost = pl.CostEstimate(
        flops=2 * C_out * C_in * B * HW,
        transcendentals=0,
        bytes_accessed=4 * (B * (C_in + C_out) * HW + C_out * C_in + C_out),
    )

    out3 = pl.pallas_call(
        _m0_conv1x1_kernel,
        out_shape=jax.ShapeDtypeStruct((B, C_out, HW), x_nchw.dtype),
        grid_spec=pltpu.PrefetchScalarGridSpec(
            num_scalar_prefetch=0,
            grid=grid,
            in_specs=[
                # weight / bias: full, resident across the whole grid
                pl.BlockSpec((C_out, C_in), lambda b, i: (0, 0)),
                pl.BlockSpec((C_out, 1), lambda b, i: (0, 0)),
                # activations: one batch element (squeezed) x one lane tile;
                # partial last tile is masked by Pallas (contraction is along
                # sublanes only, so padded lanes never pollute valid output).
                pl.BlockSpec((pl.Squeezed(), C_in, tile_n),
                             lambda b, i: (b, 0, i)),
            ],
            out_specs=pl.BlockSpec((pl.Squeezed(), C_out, tile_n),
                                   lambda b, i: (b, 0, i)),
        ),
        compiler_params=pltpu.CompilerParams(
            dimension_semantics=("parallel", "parallel"),
            vmem_limit_bytes=vmem_limit,
        ),
        cost_estimate=cost,
    )(weight, b2d, x3)

    # (B, C_out, H*W) -> NCHW: free reshape.
    return out3.reshape(B, C_out, H, W)


# ----------------------------- model forward ------------------------------ #
def model_n12_light_forward(params, x, **kw):
    """Forward pass of model_n12_light (the part defined in the module)."""
    x = m0_conv1x1(x, params["M0_w"], params["M0_b"], **kw)  # nn.Conv2d(12,3,1,1)
    x = x[:, 0:3]  # identity here since M0 outputs exactly 3 channels
    # TODO(synk): Encoder / modules.D2 / modules.MFF / modules.R1 / modules.R2
    # are external sub-modules whose definitions are not provided; not faking them.
    return x


def init_params(key):
    k_w, k_b = jax.random.split(key)
    # nn.Conv2d(12, 3, 1, 1): weight (3, 12, 1, 1) -> stored as (3, 12); bias (3,)
    fan_in = 12
    bound = 1.0 / jnp.sqrt(fan_in)
    w = jax.random.uniform(k_w, (3, 12), jnp.float32, -bound, bound)
    b = jax.random.uniform(k_b, (3,), jnp.float32, -bound, bound)
    return {"M0_w": w, "M0_b": b}


def _ref(params, x):
    return jnp.einsum("oc,bchw->bohw", params["M0_w"], x) + \
        params["M0_b"][None, :, None, None]


if __name__ == "__main__":
    key = jax.random.PRNGKey(0)
    k_p, k_x1, k_x2, k_x3 = jax.random.split(key, 4)
    params = init_params(k_p)

    # 1) Small NCHW input: B=2, C=12, H=W=16.  Default path (einsum fallback)
    #    and forced Pallas path must both match the reference.
    x1 = jax.random.normal(k_x1, (2, 12, 16, 16), jnp.float32)
    ref1 = _ref(params, x1)
    out1a = jax.block_until_ready(model_n12_light_forward(params, x1))
    out1b = jax.block_until_ready(
        model_n12_light_forward(params, x1, force_pallas=True))
    assert out1a.shape == (2, 3, 16, 16)
    assert jnp.allclose(out1a, ref1, atol=1e-5, rtol=1e-5)
    assert jnp.allclose(out1b, ref1, atol=1e-5, rtol=1e-5)

    # 2) Ragged spatial extent (H*W=400, not a multiple of 128), Pallas path.
    x2 = jax.random.normal(k_x2, (1, 12, 20, 20), jnp.float32)
    ref2 = _ref(params, x2)
    out2 = jax.block_until_ready(
        model_n12_light_forward(params, x2, force_pallas=True))
    assert out2.shape == (1, 3, 20, 20)
    assert jnp.allclose(out2, ref2, atol=1e-5, rtol=1e-5)

    # 3) Same ragged input with a tiny tile_cap: forces the cdiv-tiled path
    #    with a masked partial last lane block on every TPU generation.
    out3 = jax.block_until_ready(
        model_n12_light_forward(params, x2, force_pallas=True, tile_cap=128))
    assert jnp.allclose(out3, ref2, atol=1e-5, rtol=1e-5)

    # 4) Moderate non-aligned extent above the fallback threshold: default
    #    routing goes through the Pallas kernel (multi-tile split on v7x).
    x3 = jax.random.normal(k_x3, (1, 12, 120, 120), jnp.float32)
    ref4 = _ref(params, x3)
    out4 = jax.block_until_ready(model_n12_light_forward(params, x3))
    assert out4.shape == (1, 3, 120, 120)
    assert jnp.allclose(out4, ref4, atol=1e-5, rtol=1e-5)

    print("KERNEL_OK")
</pallas_src>

<mosaic_0001>
module attributes {stable_mosaic.version = 11 : i64} {
  func.func @_m0_conv1x1_kernel(%arg0: i32, %arg1: i32, %arg2: memref<3x12xf32, #tpu.memory_space<vmem>>, %arg3: memref<3x1xf32, #tpu.memory_space<vmem>>, %arg4: memref<1x12x256xf32, #tpu.memory_space<vmem>>, %arg5: memref<1x3x256xf32, #tpu.memory_space<vmem>>) attributes {dimension_semantics = [#tpu.dimension_semantics<parallel>, #tpu.dimension_semantics<parallel>], iteration_bounds = array<i64: 2, 1>, scalar_prefetch = 0 : i64, scratch_operands = 0 : i64, tpu.core_type = #tpu.core_type<tc>, window_params = [{pipeline_mode = #tpu.pipeline_mode<synchronous>, transform_indices = @transform_0, window_bounds = array<i64: 3, 12>}, {pipeline_mode = #tpu.pipeline_mode<synchronous>, transform_indices = @transform_1, window_bounds = array<i64: 3, 1>}, {transform_indices = @transform_2, window_bounds = array<i64: 1, 12, 256>}, {transform_indices = @transform_3, window_bounds = array<i64: 1, 3, 256>}]} {
    %c0 = arith.constant 0 : index
    %c0_0 = arith.constant 0 : index
    %0 = vector.load %arg2[%c0, %c0_0] : memref<3x12xf32, #tpu.memory_space<vmem>>, vector<3x12xf32>
    %c0_1 = arith.constant 0 : index
    %c0_2 = arith.constant 0 : index
    %c0_3 = arith.constant 0 : index
    %1 = vector.load %arg4[%c0_1, %c0_2, %c0_3] : memref<1x12x256xf32, #tpu.memory_space<vmem>>, vector<1x12x256xf32>
    %2 = vector.shape_cast %1 : vector<1x12x256xf32> to vector<12x256xf32>
    %cst = arith.constant dense<0.000000e+00> : vector<3x256xf32>
    %3 = tpu.matmul %0, %2, %cst {dimension_numbers = #tpu.dot_dimension_numbers<[1], [0], [0], [1], [0, 0, 1, 1], [], []>} : vector<3x12xf32>, vector<12x256xf32>, vector<3x256xf32> -> vector<3x256xf32>
    %c0_4 = arith.constant 0 : index
    %c0_5 = arith.constant 0 : index
    %4 = vector.load %arg3[%c0_4, %c0_5] : memref<3x1xf32, #tpu.memory_space<vmem>>, vector<3x1xf32>
    %5 = vector.broadcast %4 : vector<3x1xf32> to vector<3x256xf32>
    %6 = arith.addf %3, %5 : vector<3x256xf32>
    %c0_6 = arith.constant 0 : index
    %c0_7 = arith.constant 0 : index
    %c0_8 = arith.constant 0 : index
    %7 = vector.load %arg5[%c0_6, %c0_7, %c0_8] : memref<1x3x256xf32, #tpu.memory_space<vmem>>, vector<1x3x256xf32>
    %8 = vector.shape_cast %7 : vector<1x3x256xf32> to vector<3x256xf32>
    %9 = vector.shape_cast %6 : vector<3x256xf32> to vector<1x3x256xf32>
    tpu.vector_store %arg5[%c0_6, %c0_7, %c0_8], %9 {strides = array<i32>} : memref<1x3x256xf32, #tpu.memory_space<vmem>>, vector<1x3x256xf32>,
    return
  }
  func.func @transform_0(%arg0: i32, %arg1: i32) -> (i32, i32) {
    %c0_i32 = arith.constant 0 : i32
    %c0_i32_0 = arith.constant 0 : i32
    %c0_i32_1 = arith.constant 0 : i32
    return %c0_i32, %c0_i32_0 : i32, i32
  }
  func.func @transform_1(%arg0: i32, %arg1: i32) -> (i32, i32) {
    %c0_i32 = arith.constant 0 : i32
    %c0_i32_0 = arith.constant 0 : i32
    %c0_i32_1 = arith.constant 0 : i32
    return %c0_i32, %c0_i32_0 : i32, i32
  }
  func.func @transform_2(%arg0: i32, %arg1: i32) -> (i32, i32, i32) {
    %c0_i32 = arith.constant 0 : i32
    %c0_i32_0 = arith.constant 0 : i32
    return %arg0, %c0_i32, %arg1 : i32, i32, i32
  }
  func.func @transform_3(%arg0: i32, %arg1: i32) -> (i32, i32, i32) {
    %c0_i32 = arith.constant 0 : i32
    %c0_i32_0 = arith.constant 0 : i32
    return %arg0, %c0_i32, %arg1 : i32, i32, i32
  }
}

</mosaic_0001>

<bundles_post_ra>
// kernel: tpu_custom_call.1
= control target key start
LH: loop header
LB: loop body
LE: loop exit
PB: predicated region body
PF: predicated region fallthrough
CT: control target
= control target key end

     0   :  { %s453_s12 = smov 0   ;;  %s455_s13 = smov 0   ;;  %s495_s0 = inlined_call_operand.vmem [shape: f32[3,12], index: 0, kind: input, shape index: {}]   ;;  %s496_s1 = inlined_call_operand.vmem [shape: f32[3,1], index: 1, kind: input, shape index: {}]   ;;  %s497_s2 = inlined_call_operand.vmem [shape: f32[2,12,256], index: 2, kind: input, shape index: {}]   ;;  %s498_s3 = inlined_call_operand.vmem [shape: f32[2,3,256], index: 3, kind: output, shape index: {}]  }
   0x1   :  { %s457_s14 = smov 0  }
   0x2 LB: > { %s25_s15 = sadd.s32 1, %s426_s13  ;;  %p369_p0 = scmp.ge.s32.totalorder %s430_s14, 1  ;;  %s430_s14 = sphi %s457_s14, %s13_s14   ;;  %s426_s13 = sphi %s455_s13, %s500_s13   ;;  %s422_s12 = sphi %s453_s12, %s499_s12  }
   0x3   : > { %p27_p1 = scmp.ge.s32.totalorder %s25_s15, 2  ;;  %p158_p2 = scmp.lt.s32.totalorder %s430_s14, 3 }
   0x5   : > { %s502_s15 = smov (%p27_p1, %s25_s15), 0  ;;  %p159_p3 = pnand %p369_p0, %p158_p2 }
   0x6   : > { %p191_p4 = scmp.lt.s32.totalorder (!%p159_p3), %s422_s12, 1 }
   0x7   : > { %162 = sbr.rel (%p159_p3) target bundleno = 151 (0x97), region = 32 }
   0xc   : > { %v432_v0 = vmov 0   ;;  %v215_v1 = vld [vmem:[%s496_s1] sm:$0x7]  ;;  %s504_s12 = smov (!%p191_p4, %s422_s12), 1  ;;  %vm225_vm0 = vcmask 1043456   ;;  %vm221_vm1 = vcmask 97280  }
   0xd   : > { %407 = vset.pattern.permute.xlu0 %v432_v0  ;;  %s380_s18 = sshll.u32 %s504_s12, 5  ;;  %v210_v6 = vld [vmem:[%s495_s0] sm:$0x7]  ;;  %s381_s24 = sshll.u32 %s504_s12, 3 }
   0xe   : > { %218 = vperm.xlu0 %407, %v215_v1   ;;  %s198_s21 = scalar_lea.vmem %s497_s2, %s380_s18  ;;  %s208_s27 = scalar_lea.vmem %s498_s3, %s381_s24 }
   0xf   : > { %v213_v2 = vld [vmem:[%s198_s21 + $0x10] sm:$0xf]  ;;  %v214_v3 = vld [vmem:[%s198_s21 + $0x18] sm:$0xf]  ;;  %v211_v4 = vld [vmem:[%s198_s21] sm:$0xff] }
  0x10   : > { %374 = vmatpush.msk.msra.mxu0 %vm225_vm0, %v213_v2  ;;  %376 = vmatpush.msk.msra.mxu1 %vm225_vm0, %v214_v3  ;;  %v212_v5 = vld [vmem:[%s198_s21 + $0x8] sm:$0xff] }
  0x12   : > { %247 = vmatpush.msra.mxu0 %v211_v4  ;;  %267 = vmatpush.msra.mxu1 %v212_v5 }
  0x13   : > { %375 = vmatmul.msk.f32.vlgmr.msra.gmra.mxu0 %vm221_vm1, %v210_v6  ;;  %377 = vmatmul.msk.f32.vlgmr.msra.gmra.mxu1 %vm221_vm1, %v210_v6 }
  0x80   : > { %v219_v7 = vpop.permute.xlu0 %218 }
  0x90   : > { %v249_v8 = vpop.f32.mrf.mxu0  ;;  %v269_v9 = vpop.f32.mrf.mxu1 }
  0x91   : > { %v270_v10 = vadd.f32 %v269_v9, %v219_v7  ;;  %v250_v11 = vadd.f32 %v249_v8, %v219_v7 }
  0x93   : > { %v274_v12 = vrot.slane %v270_v10, 4 }
  0x95   : > { %v275_v13 = vsel %vm225_vm0, %v250_v11, %v274_v12 }
  0x96   : > { %277 = vst [vmem:[%s208_s27] sm:$0x77] %v275_v13 }
  0x97 PF: > { %s13_s14 = sadd.s32 1, %s430_s14   ;;  %s499_s12 = smov %s426_s13 }
  0x98   : > { %p10_p5 = scmp.ge.s32.totalorder %s13_s14, 4   ;;  %s500_s13 = smov %s502_s15 }
  0x9a   :  { %12 = sbr.rel (!%p10_p5) target bundleno = 2 (0x2), region = 62 }

</bundles_post_ra>
